<compile_context>
chip_gen: v6e
topology: v6e:2x2x1
jax: 0.10.0
libtpu: 0.0.40
codegen_flags: <defaults>
</compile_context>

<pallas_src>
import jax
import jax.numpy as jnp
from jax.experimental import pallas as pl
from jax.experimental.pallas import tpu as pltpu

EPS = 1e-12  # PyTorch F.normalize default eps


def l2norm_kernel(x_ref, o_ref):
    x = x_ref[...].astype(jnp.float32)
    sumsq = jnp.sum(x * x, axis=-1, keepdims=True)            # (tm, 1)
    # max(sqrt(s), eps) == sqrt(max(s, eps^2)); rsqrt on EUP + vmul on VPU.
    inv = jax.lax.rsqrt(jnp.maximum(sumsq, EPS * EPS))        # (tm, 1)
    o_ref[...] = (x * inv).astype(o_ref.dtype)


def _round_up(v, m):
    return ((v + m - 1) // m) * m


def l2_normalize(x, *, block_rows=None, target_tile_bytes=2 << 20):
    """L2-normalize x of shape (B, D) along axis=1 (== torch F.normalize(p=2, dim=1))."""
    B, D = x.shape
    orig_dtype = x.dtype
    itemsize = jnp.dtype(orig_dtype).itemsize
    # Sublane alignment for unmasked tiles: 8 rows for 32-bit, 16 for 16-bit dtypes.
    row_align = 8 if itemsize >= 4 else 16

    # Lane-dense output: pad feature dim up to a multiple of 128.
    D_pad = _round_up(max(D, 128), 128)

    if block_rows is None:
        # Memory-bound: largest row tile under the byte budget, aligned to the
        # sublane packing, but keep >= 2 grid steps when possible (megacore).
        rows = max(row_align, target_tile_bytes // (D_pad * itemsize))
        rows = (rows // row_align) * row_align
        b_ceil = _round_up(B, row_align)
        if b_ceil >= 2 * row_align:
            rows = min(rows, ((b_ceil // 2) // row_align) * row_align or row_align)
        block_rows = max(min(rows, b_ceil), row_align)

    B_pad = _round_up(B, block_rows)

    xp = x
    if (B_pad, D_pad) != (B, D):
        # Zero padding: padded columns don't change any real row's norm;
        # padded rows normalize to 0 and are sliced away below.
        xp = jnp.pad(x, ((0, B_pad - B), (0, D_pad - D)))

    grid = (B_pad // block_rows,)

    # Double-buffered input + output tiles (~4x tile) plus headroom; safe on
    # v5e/v6e (128 MiB VMEM) and v7x (64 MiB VMEM).
    tile_bytes = block_rows * D_pad * itemsize
    vmem_limit = min(max(int(6 * tile_bytes), 16 << 20), 48 << 20)

    out = pl.pallas_call(
        l2norm_kernel,
        out_shape=jax.ShapeDtypeStruct((B_pad, D_pad), orig_dtype),
        grid=grid,
        in_specs=[pl.BlockSpec((block_rows, D_pad), lambda i: (i, 0))],
        out_specs=pl.BlockSpec((block_rows, D_pad), lambda i: (i, 0)),
        compiler_params=pltpu.CompilerParams(
            dimension_semantics=("parallel",),
            vmem_limit_bytes=vmem_limit,
        ),
    )(xp)

    if (B_pad, D_pad) != (B, D):
        out = out[:B, :D]
    return out


def _ref_l2_normalize(x):
    return x / jnp.maximum(jnp.sqrt(jnp.sum(x * x, axis=1, keepdims=True)), EPS)


if __name__ == "__main__":
    key = jax.random.PRNGKey(0)

    # Embedding-like shape consistent with the module usage (B, D), axis=1.
    B, D = 16, 256
    x = jax.random.normal(key, (B, D), dtype=jnp.float32)
    out = jax.block_until_ready(l2_normalize(x))
    ref = _ref_l2_normalize(x)
    assert out.shape == x.shape and out.dtype == x.dtype
    assert jnp.allclose(out, ref, atol=1e-6, rtol=1e-6)

    # Ragged / non-128-aligned shape to exercise the wrapper padding path.
    k2 = jax.random.fold_in(key, 1)
    x2 = jax.random.normal(k2, (10, 96), dtype=jnp.float32)
    out2 = jax.block_until_ready(l2_normalize(x2))
    ref2 = _ref_l2_normalize(x2)
    assert out2.shape == x2.shape and out2.dtype == x2.dtype
    assert jnp.allclose(out2, ref2, atol=1e-6, rtol=1e-6)

    print("KERNEL_OK")
</pallas_src>

<mosaic_0001>
module attributes {stable_mosaic.version = 11 : i64} {
  func.func @l2norm_kernel(%arg0: i32, %arg1: memref<8x256xf32, #tpu.memory_space<vmem>>, %arg2: memref<8x256xf32, #tpu.memory_space<vmem>>) attributes {dimension_semantics = [#tpu.dimension_semantics<parallel>], iteration_bounds = array<i64: 2>, scalar_prefetch = 0 : i64, scratch_operands = 0 : i64, tpu.core_type = #tpu.core_type<tc>, window_params = [{transform_indices = @transform_0, window_bounds = array<i64: 8, 256>}, {transform_indices = @transform_1, window_bounds = array<i64: 8, 256>}]} {
    %c0 = arith.constant 0 : index
    %c0_0 = arith.constant 0 : index
    %0 = vector.load %arg1[%c0, %c0_0] : memref<8x256xf32, #tpu.memory_space<vmem>>, vector<8x256xf32>
    %1 = arith.mulf %0, %0 : vector<8x256xf32>
    %cst = arith.constant dense<0.000000e+00> : vector<8xf32>
    %2 = vector.multi_reduction <add>, %1, %cst [1] : vector<8x256xf32> to vector<8xf32>
    %3 = vector.shape_cast %2 : vector<8xf32> to vector<8x1xf32>
    %cst_1 = arith.constant 1.000000e-24 : f32
    %4 = vector.broadcast %cst_1 : f32 to vector<8x1xf32>
    %5 = arith.maximumf %3, %4 : vector<8x1xf32>
    %6 = math.rsqrt %5 : vector<8x1xf32>
    %7 = vector.broadcast %6 : vector<8x1xf32> to vector<8x256xf32>
    %8 = arith.mulf %0, %7 : vector<8x256xf32>
    %c0_2 = arith.constant 0 : index
    %c0_3 = arith.constant 0 : index
    %9 = vector.load %arg2[%c0_2, %c0_3] : memref<8x256xf32, #tpu.memory_space<vmem>>, vector<8x256xf32>
    tpu.vector_store %arg2[%c0_2, %c0_3], %8 {strides = array<i32>} : memref<8x256xf32, #tpu.memory_space<vmem>>, vector<8x256xf32>,
    return
  }
  func.func @transform_0(%arg0: i32) -> (i32, i32) {
    %c0_i32 = arith.constant 0 : i32
    %c0_i32_0 = arith.constant 0 : i32
    return %arg0, %c0_i32 : i32, i32
  }
  func.func @transform_1(%arg0: i32) -> (i32, i32) {
    %c0_i32 = arith.constant 0 : i32
    %c0_i32_0 = arith.constant 0 : i32
    return %arg0, %c0_i32 : i32, i32
  }
}

</mosaic_0001>

<bundles_post_ra>
// kernel: tpu_custom_call.1
= control target key start
LH: loop header
LB: loop body
LE: loop exit
PB: predicated region body
PF: predicated region fallthrough
CT: control target
= control target key end

     0   :  { %6 = vsyncpa [#allocation3], 0  ;;  %s548_s0 = inlined_call_operand.hbm [shape: f32[16,256], index: 0, kind: input, shape index: {}]   ;;  %s549_s1 = inlined_call_operand.hbm [shape: f32[16,256], index: 1, kind: output, shape index: {}]  }
   0x1   :  { %8 = vsyncpa [#allocation3 + $0x1], 0 }
   0x2   :  { %9 = vsyncpa [#allocation4], 0 }
   0x3   :  { %11 = vsyncpa [#allocation4 + $0x1], 0  ;;  %s401_s6 = smov 0   ;;  %s403_s7 = smov 0  }
   0x4   :  { %s405_s8 = smov 0   ;;  %s407_s9 = smov 0  }
   0x5 LB: > { %s422_s10 = sadd.s32 4294967295, %s387_s9   ;;  %s231_s11 = sadd.s32 4294967294, %s387_s9   ;;  %s387_s9 = sphi %s407_s9, %s566_s9   ;;  %s383_s8 = sphi %s405_s8, %s565_s8   ;;  %s379_s7 = sphi %s403_s7, %s564_s7   ;;  %s375_s6 = sphi %s401_s6, %s563_s6  }
   0x6   : > { %s426_s12 = sadd.s32 1, %s387_s9   ;;  %s24_s13 = sadd.s32 1, %s383_s8 }
   0x7   : > { %s21_s14 = ssub.s32 %s387_s9, %s426_s12  ;;  %p31_p0 = scmp.ne.s32.totalorder %s383_s8, %s379_s7 }
   0x8   : > { %p22_p1 = scmp.eq.s32.totalorder %s21_s14, 0  ;;  %p32_p2 = scmp.eq.s32.totalorder %s387_s9, 0 }
   0x9   : > { %p37_p3 = scmp.ne.s32.totalorder %s379_s7, %s375_s6  ;;  %p38_p4 = scmp.eq.s32.totalorder %s422_s10, 0 }
   0xa   : > { %s438_s15 = scalar_select %p22_p1, %s383_s8, %s24_s13  }
   0xb   : > { %p440_p5 = por %p32_p2, %p31_p0  ;;  %p444_p6 = por %p38_p4, %p37_p3 }
   0xc   : > { %p61_p7 = scmp.eq.s32.totalorder %s422_s10, 1  ;;  %p67_p8 = scmp.eq.s32.totalorder %s231_s11, 1 }
   0xd   : > { %s553_s17 = scalar_select %p444_p6, 1, 0 }
   0xe   : > { %p259_p10 = scmp.lt.s32.totalorder %s387_s9, 2  ;;  %p451_p11 = por %p61_p7, %p31_p0 }
   0xf   : > { %p455_p12 = por %p67_p8, %p37_p3  ;;  %s87_s20 = sand.u32 1, %s383_s8  }
  0x10   : > { %s554_s18 = scalar_select %p451_p11, 1, 0 }
  0x11   : > { %s555_s19 = scalar_select %p455_p12, 1, 0 }
  0x12   : > { %s245_s21 = sshll.u32 %s387_s9, 8  ;;  %s234_s22 = sshll.u32 %s87_s20, 4 }
  0x13   : > { %s464_s25 = scalar_lea.hbm %s548_s0, %s245_s21  ;;  %s91_s26 = scalar_lea.vmem [#allocation2], %s234_s22 }
  0x14   : > { %s99_s27 = sshll.u32 %s91_s26, 4  ;;  %p468_p13 = pnand %p259_p10, %p440_p5  ;;  %s472_s27 = int_to_ptr.vmem [resolvable:$true] %s99_s27 }
  0x15   : > { %s88_s29 = scalar_lea.sflag [#allocation3], %s87_s20  ;;  %s295_s30 = scalar_lea.hbm %s464_s25, 256 }
  0x16   : > { %p296_p2 = scmp.ne.s32.totalorder %s464_s25, %s295_s30  ;;  %p297_p3 = pneg %p468_p13 }
  0x17   : > { %s300_s4 = scalar_lea.hbm %s548_s0, 512  ;;  %p301_p5 = scmp.lt.s32.totalorder %s464_s25, %s548_s0 }
  0x18   : > { %p298_p4 = pnand %p297_p3, %p296_p2  ;;  %p302_p8 = scmp.lt.s32.totalorder %s300_s4, %s295_s30 }
  0x1a   : > { %p299_p7 = pneg %p298_p4  ;;  %p303_p10 = por %p302_p8, %p301_p5 }
  0x1c   : > { %p304_p9 = pnand %p303_p10, %p299_p7 }
  0x1e   : > { %307 = shalt.err (!%p304_p9)
}
  0x1f   : > { %s308_s13 = scalar_lea.vmem %s472_s27, 256  ;;  %s389_s14 = smov [#allocation2]  }
  0x20   : > { %p309_p0 = scmp.ne.s32.totalorder %s472_s27, %s308_s13  ;;  %s313_s16 = sshll.u32 %s389_s14, 4  ;;  %s314_s16 = int_to_ptr.vmem [resolvable:$false] %s313_s16 }
  0x21   : > { %s315_s20 = scalar_lea.vmem %s314_s16, 512  ;;  %p316_p4 = scmp.lt.s32.totalorder %s472_s27, %s314_s16 }
  0x22   : > { %p311_p1 = pnand %p309_p0, %p297_p3  ;;  %p317_p12 = scmp.lt.s32.totalorder %s315_s20, %s308_s13 }
  0x24   : > { %p312_p2 = pneg %p311_p1  ;;  %p318_p11 = por %p317_p12, %p316_p4 }
  0x26   : > { %p319_p6 = pnand %p318_p11, %p312_p2 }
  0x28   : > { %322 = shalt.err (!%p319_p6)
}
  0x29   : > { %254 = dma.hbm_to_vmem [thread:$0]  (!%p468_p13), %s464_s25, 256, %s472_s27, %s88_s29  }
  0x2a   : > { %p557_p9 = scmp.lt.s32.totalorder %s387_s9, 3  ;;  %p558_p7 = scmp.ge.s32.totalorder %s387_s9, 1 }
  0x2c   : > { %p105_p0 = pnand %p558_p7, %p557_p9 }
  0x2d   : > { %s499_s21 = sand.u32 (!%p105_p0), 1, %s379_s7   ;;  %p559_p6 = scmp.ne.s32.totalorder (!%p105_p0), %s553_s17, 0 }
  0x2e   : > { %108 = sbr.rel (%p105_p0) target bundleno = 226 (0xe2), region = 24  ;;  %s238_s22 = sshll.u32 (!%p105_p0), %s499_s21, 4 }
  0x2f   : > { %s111_s23 = scalar_lea.sflag (!%p105_p0), [#allocation3], %s499_s21  ;;  %s114_s24 = scalar_lea.vmem (!%p105_p0), [#allocation2], %s238_s22 }
  0x33   : > { %366 = dma.done.wait (%p559_p6), %s111_s23, 256  }
  0x34   : > { %368 = vsyncadd (%p559_p6), %s111_s23, 4294967040  ;;  %v133_v0 = vld [vmem:[%s114_s24] sm:$0xff]  ;;  %v134_v1 = vld [vmem:[%s114_s24 + $0x8] sm:$0xff]  ;;  %s246_s25 = sshll.u32 %s422_s10, 8  ;;  %s132_s26 = scalar_lea.vmem [#allocation5], %s238_s22 }
  0x35   : > { %v135_v2 = vmul.f32 %v133_v0, %v133_v0  ;;  %v136_v3 = vmul.f32 %v134_v1, %v134_v1  ;;  %s161_s27 = sshll.u32 %s132_s26, 4  ;;  %s511_s29 = scalar_lea.hbm %s549_s1, %s246_s25  ;;  %s162_s27 = int_to_ptr.vmem [resolvable:$true] %s161_s27 }
  0x36   : > { %s147_s30 = scalar_lea.sflag [#allocation4], %s499_s21  ;;  %s323_s2 = scalar_lea.vmem %s162_s27, 256 }
  0x37   : > { %v137_v4 = vadd.f32 %v136_v3, %v135_v2  ;;  %p324_p11 = scmp.ne.s32.totalorder %s162_s27, %s323_s2  ;;  %p560_p12 = scmp.ne.s32.totalorder %s554_s18, 0 }
  0x38   : > { %s390_s10 = smov [#allocation5]  }
  0x39   : > { %138 = vadd.xlane.f32.xlu0 %v137_v4  ;;  %p325_p13 = pnand %p324_p11, %p560_p12  ;;  %s327_s3 = sshll.u32 %s390_s10, 4  ;;  %s328_s3 = int_to_ptr.vmem [resolvable:$false] %s327_s3 }
  0x3a   : > { %s329_s4 = scalar_lea.vmem %s328_s3, 512  ;;  %p330_p3 = scmp.lt.s32.totalorder %s162_s27, %s328_s3 }
  0x3b   : > { %p326_p1 = pneg %p325_p13  ;;  %p331_p5 = scmp.lt.s32.totalorder %s329_s4, %s323_s2 }
  0x3d   : > { %p332_p8 = por %p331_p5, %p330_p3 }
  0x3f   : > { %p333_p10 = pnand %p332_p8, %p326_p1 }
  0xc2   : > { %v139_v5 = vpop.xlane.xlu0 %138 }
  0xc3   : > { %v140_v6 = vmax.f32 %v139_v5, 1e-24 }
  0xc5   : > { %293 = vrsqrt.f32 %v140_v6 }
  0xd2   : > { %v294_v7 = vpop.eup %293 }
  0xd3   : > { %v142_v8 = vmul.f32 %v294_v7, %v133_v0  ;;  %v143_v9 = vmul.f32 %v294_v7, %v134_v1 }
  0xd5   : > { %144 = vst [vmem:[%s132_s26] sm:$0xff] %v142_v8  ;;  %145 = vst [vmem:[%s132_s26 + $0x8] sm:$0xff] %v143_v9 }
  0xd6   : > { %336 = shalt.err (!%p333_p10)
}
  0xd7   : > { %s337_s5 = scalar_lea.hbm %s511_s29, 256  ;;  %s341_s14 = scalar_lea.hbm %s549_s1, 512 }
  0xd8   : > { %p338_p2 = scmp.ne.s32.totalorder %s511_s29, %s337_s5  ;;  %p342_p7 = scmp.lt.s32.totalorder %s511_s29, %s549_s1 }
  0xd9   : > { %p343_p0 = scmp.lt.s32.totalorder %s341_s14, %s337_s5 }
  0xda   : > { %p339_p4 = pnand %p338_p2, %p560_p12 }
  0xdb   : > { %p344_p6 = por %p343_p0, %p342_p7 }
  0xdc   : > { %p340_p9 = pneg %p339_p4 }
  0xde   : > { %p345_p11 = pnand %p344_p6, %p340_p9 }
  0xe0   : > { %348 = shalt.err (!%p345_p11)
}
  0xe1   : > { %249 = dma.vmem_to_hbm [thread:$0]  (%p560_p12), %s162_s27, 256, %s511_s29, %s147_s30  }
  0xe2 PF: > { %s173_s21 = sand.u32 1, %s375_s6   ;;  %p561_p13 = scmp.ne.s32.totalorder %s555_s19, 0 }
  0xe3   : > { %p562_p1 = scmp.ge.s32.totalorder %s387_s9, 2  ;;  %s174_s22 = scalar_lea.sflag [#allocation4], %s173_s21 }
  0xe5   : > { %p256_p3 = pnand %p562_p1, %p561_p13 }
  0xe7   : > { %p257_p5 = pneg %p256_p3 }
  0xe9   : > { %370 = dma.done.wait (%p257_p5), %s174_s22, 256  }
  0xea   : > { %372 = vsyncadd (%p257_p5), %s174_s22, 4294967040  ;;  %p14_p8 = scmp.ge.s32.totalorder %s426_s12, 4   ;;  %s563_s6 = smov %s379_s7 }
  0xeb   : > { %s564_s7 = smov %s383_s8  ;;  %s565_s8 = smov %s438_s15 }
  0xec   : > { %s566_s9 = smov %s426_s12  ;;  %16 = sbr.rel (!%p14_p8) target bundleno = 5 (0x5), region = 69 }
  0xf1   :  { %179 = vsyncpa [#allocation3], 1 }
  0xf2   :  { %181 = vsyncpa [#allocation3 + $0x1], 1 }
  0xf3   :  { %182 = vsyncpa [#allocation4], 1 }
  0xf4   :  { %184 = vsyncpa [#allocation4 + $0x1], 1 }

</bundles_post_ra>
